<compile_context>
chip_gen: v7x
topology: tpu7x:2x2x1
jax: 0.10.0
libtpu: 0.0.40
codegen_flags: <defaults>
</compile_context>

<pallas_src>
import jax
import jax.numpy as jnp
import numpy as np
from jax.experimental import pallas as pl
from jax.experimental.pallas import tpu as pltpu


def transition_kernel(x_ref, scale_ref, shift_ref, w_ref, o_ref):
    # x_ref:     (TH, W, Cin)       one row-tile of one image, HWC
    # scale_ref: (1, Cin)           folded BN scale = gamma / sqrt(var + eps)
    # shift_ref: (1, Cin)           folded BN shift = beta - mean * scale
    # w_ref:     (Cin, Cout) bf16   1x1 conv weight (transposed for matmul)
    # o_ref:     (TH//2, Wo, Cout)
    TH, W, Cin = x_ref.shape
    THo, Wo, Cout = o_ref.shape

    x = x_ref[...].astype(jnp.float32)
    scale = scale_ref[...].reshape(1, 1, Cin)
    shift = shift_ref[...].reshape(1, 1, Cin)

    # BatchNorm (inference, folded) + ReLU on the VPU in f32.
    y = jnp.maximum(x * scale + shift, 0.0)

    # 2x2 average pool (stride 2) BEFORE the 1x1 conv (pool and 1x1 conv are
    # both linear, so the order is mathematically equivalent).  The channel /
    # lane dim is never touched by either pooling step.
    yh = y.reshape(THo, 2, W, Cin).sum(axis=1)     # pool H: leading-dim split
    yw = yh.reshape(THo, Wo, 2, Cin).sum(axis=2)   # pool W: sublane-pair sum
    p = yw * 0.25

    # 1x1 conv == per-pixel channel matmul: bf16 operands on the MXU, f32 acc.
    z = jnp.dot(p.reshape(THo * Wo, Cin).astype(jnp.bfloat16),
                w_ref[...],
                preferred_element_type=jnp.float32)          # (THo*Wo, Cout)
    o_ref[...] = z.reshape(THo, Wo, Cout).astype(o_ref.dtype)


def _pick_tile_h(H, W, Cin, itemsize, budget_bytes=2 << 20, min_row_tiles=2):
    """Largest even divisor of H that (a) keeps the per-step input tile under
    a conservative VMEM budget (safe for v5e's 16 MiB / v7x's 32 MiB scoped
    defaults once double-buffered + f32 intermediates) and (b) still gives at
    least `min_row_tiles` row tiles per image for pipelining / megacore
    balance."""
    target = max(2, H // min_row_tiles)
    best = 2
    for th in range(2, H + 1, 2):
        if H % th != 0 or th > target:
            continue
        if th * W * Cin * max(itemsize, 4) <= budget_bytes:
            best = th
    return best


def transition_layer_nhwc(x_nhwc, gamma, beta, running_mean, running_var,
                          conv_w, eps=1e-5, tile_h=None):
    """Core NHWC entry point (no layout transposes).
    x_nhwc: (N, H, W, Cin); conv_w: (Cout, Cin, 1, 1) (PyTorch layout)."""
    N, H, W, Cin = x_nhwc.shape
    Cout = conv_w.shape[0]
    assert H % 2 == 0 and W % 2 == 0, "2x2/stride-2 pool expects even H, W"
    Ho, Wo = H // 2, W // 2

    # Fold BN (eval mode, running stats) into per-channel scale/shift (f32).
    # TODO(synk): training-mode BN (batch statistics) is not fused here.
    inv_std = jax.lax.rsqrt(running_var.astype(jnp.float32) + eps)
    g32 = gamma.astype(jnp.float32)
    scale = (g32 * inv_std).reshape(1, Cin)
    shift = (beta.astype(jnp.float32)
             - running_mean.astype(jnp.float32) * g32 * inv_std).reshape(1, Cin)

    # DenseNet convention: 1x1 conv has no bias (BN precedes it).
    # Pre-cast once to bf16 for the MXU fast path (f32 accumulation in-kernel).
    w = conv_w.reshape(Cout, Cin).T.astype(jnp.bfloat16)       # (Cin, Cout)

    TH = tile_h if tile_h is not None else _pick_tile_h(
        H, W, Cin, jnp.dtype(x_nhwc.dtype).itemsize)
    grid = (N, H // TH)

    # Note: for production DenseNet shapes Cout is a multiple of 128, so the
    # output stores are already lane-dense; tiny demo Cout uses masked stores.
    return pl.pallas_call(
        transition_kernel,
        out_shape=jax.ShapeDtypeStruct((N, Ho, Wo, Cout), x_nhwc.dtype),
        grid=grid,
        in_specs=[
            pl.BlockSpec((None, TH, W, Cin), lambda n, h: (n, h, 0, 0)),
            pl.BlockSpec((1, Cin), lambda n, h: (0, 0)),     # resident
            pl.BlockSpec((1, Cin), lambda n, h: (0, 0)),     # resident
            pl.BlockSpec((Cin, Cout), lambda n, h: (0, 0)),  # resident
        ],
        out_specs=pl.BlockSpec((None, TH // 2, Wo, Cout),
                               lambda n, h: (n, h, 0, 0)),
        compiler_params=pltpu.CompilerParams(
            dimension_semantics=("parallel", "parallel")),
    )(x_nhwc, scale, shift, w)


def transition_layer(x_nchw, gamma, beta, running_mean, running_var, conv_w,
                     eps=1e-5):
    """PyTorch-layout wrapper. x_nchw: (N, Cin, H, W) -> (N, Cout, H/2, W/2).
    # TODO(synk): the NCHW<->NHWC transposes each cost an extra HBM round trip;
    # NHWC-end-to-end models should call transition_layer_nhwc directly."""
    x_nhwc = jnp.transpose(x_nchw, (0, 2, 3, 1))   # keep native dtype (no f32 upcast)
    out_nhwc = transition_layer_nhwc(x_nhwc, gamma, beta, running_mean,
                                     running_var, conv_w, eps)
    return jnp.transpose(out_nhwc, (0, 3, 1, 2))


def reference(x, gamma, beta, mean, var, conv_w, eps=1e-5):
    """Plain-JAX reference of the PyTorch forward (NCHW)."""
    xn = (x - mean[None, :, None, None]) / jnp.sqrt(var[None, :, None, None] + eps)
    y = jnp.maximum(xn * gamma[None, :, None, None] + beta[None, :, None, None], 0.0)
    w = conv_w.reshape(conv_w.shape[0], conv_w.shape[1])
    z = jnp.einsum("nchw,oc->nohw", y, w)
    N, C, H, W = z.shape
    return z.reshape(N, C, H // 2, 2, W // 2, 2).mean(axis=(3, 5))


if __name__ == "__main__":
    # Small shapes consistent with the module: in_channels=4, compression=0.5
    N, Cin, H, W = 2, 4, 16, 16
    Cout = int(np.round(Cin * 0.5))            # TransitionLayer.out_channels

    key = jax.random.PRNGKey(0)
    kx, kg, kb, km, kv, kw = jax.random.split(key, 6)

    x = jax.random.normal(kx, (N, Cin, H, W), dtype=jnp.float32)
    gamma = jax.random.normal(kg, (Cin,), dtype=jnp.float32) * 0.1 + 1.0
    beta = jax.random.normal(kb, (Cin,), dtype=jnp.float32) * 0.1
    running_mean = jax.random.normal(km, (Cin,), dtype=jnp.float32) * 0.1
    running_var = jax.random.uniform(kv, (Cin,), dtype=jnp.float32,
                                     minval=0.5, maxval=1.5)
    conv_w = jax.random.normal(kw, (Cout, Cin, 1, 1), dtype=jnp.float32) * 0.1

    out = transition_layer(x, gamma, beta, running_mean, running_var, conv_w)
    out = jax.block_until_ready(out)

    ref = reference(x, gamma, beta, running_mean, running_var, conv_w)
    assert out.shape == (N, Cout, H // 2, W // 2), out.shape
    # bf16 MXU matmul (f32 accumulation) -> slightly looser tolerance than f32.
    assert jnp.allclose(out, ref, atol=2e-2, rtol=2e-2), "mismatch vs reference"

    print("KERNEL_OK")
</pallas_src>

<mosaic_0001>
module attributes {stable_mosaic.version = 11 : i64} {
  func.func @transition_kernel(%arg0: i32, %arg1: i32, %arg2: memref<1x8x16x4xf32, #tpu.memory_space<vmem>>, %arg3: memref<1x4xf32, #tpu.memory_space<vmem>>, %arg4: memref<1x4xf32, #tpu.memory_space<vmem>>, %arg5: memref<4x2xbf16, #tpu.memory_space<vmem>>, %arg6: memref<1x4x8x2xf32, #tpu.memory_space<vmem>>) attributes {dimension_semantics = [#tpu.dimension_semantics<parallel>, #tpu.dimension_semantics<parallel>], iteration_bounds = array<i64: 2, 2>, scalar_prefetch = 0 : i64, scratch_operands = 0 : i64, tpu.core_type = #tpu.core_type<tc>, window_params = [{transform_indices = @transform_0, window_bounds = array<i64: 1, 8, 16, 4>}, {pipeline_mode = #tpu.pipeline_mode<synchronous>, transform_indices = @transform_1, window_bounds = array<i64: 1, 4>}, {pipeline_mode = #tpu.pipeline_mode<synchronous>, transform_indices = @transform_2, window_bounds = array<i64: 1, 4>}, {pipeline_mode = #tpu.pipeline_mode<synchronous>, transform_indices = @transform_3, window_bounds = array<i64: 4, 2>}, {transform_indices = @transform_4, window_bounds = array<i64: 1, 4, 8, 2>}]} {
    %c0 = arith.constant 0 : index
    %c0_0 = arith.constant 0 : index
    %c0_1 = arith.constant 0 : index
    %c0_2 = arith.constant 0 : index
    %0 = vector.load %arg2[%c0, %c0_0, %c0_1, %c0_2] : memref<1x8x16x4xf32, #tpu.memory_space<vmem>>, vector<1x8x16x4xf32>
    %1 = vector.shape_cast %0 : vector<1x8x16x4xf32> to vector<8x16x4xf32>
    %c0_3 = arith.constant 0 : index
    %c0_4 = arith.constant 0 : index
    %2 = vector.load %arg3[%c0_3, %c0_4] : memref<1x4xf32, #tpu.memory_space<vmem>>, vector<1x4xf32>
    %3 = vector.shape_cast %2 : vector<1x4xf32> to vector<1x1x4xf32>
    %c0_5 = arith.constant 0 : index
    %c0_6 = arith.constant 0 : index
    %4 = vector.load %arg4[%c0_5, %c0_6] : memref<1x4xf32, #tpu.memory_space<vmem>>, vector<1x4xf32>
    %5 = vector.shape_cast %4 : vector<1x4xf32> to vector<1x1x4xf32>
    %6 = vector.broadcast %3 : vector<1x1x4xf32> to vector<8x16x4xf32>
    %7 = arith.mulf %1, %6 : vector<8x16x4xf32>
    %8 = vector.broadcast %5 : vector<1x1x4xf32> to vector<8x16x4xf32>
    %9 = arith.addf %7, %8 : vector<8x16x4xf32>
    %cst = arith.constant 0.000000e+00 : f32
    %10 = vector.broadcast %cst : f32 to vector<8x16x4xf32>
    %11 = arith.maximumf %9, %10 : vector<8x16x4xf32>
    %12 = vector.shape_cast %11 : vector<8x16x4xf32> to vector<4x2x16x4xf32>
    %cst_7 = arith.constant dense<0.000000e+00> : vector<4x16x4xf32>
    %13 = vector.multi_reduction <add>, %12, %cst_7 [1] : vector<4x2x16x4xf32> to vector<4x16x4xf32>
    %14 = vector.shape_cast %13 : vector<4x16x4xf32> to vector<4x8x2x4xf32>
    %cst_8 = arith.constant dense<0.000000e+00> : vector<4x8x4xf32>
    %15 = vector.multi_reduction <add>, %14, %cst_8 [2] : vector<4x8x2x4xf32> to vector<4x8x4xf32>
    %cst_9 = arith.constant 2.500000e-01 : f32
    %16 = vector.broadcast %cst_9 : f32 to vector<4x8x4xf32>
    %17 = arith.mulf %15, %16 : vector<4x8x4xf32>
    %18 = vector.shape_cast %17 : vector<4x8x4xf32> to vector<32x4xf32>
    %19 = arith.truncf %18 : vector<32x4xf32> to vector<32x4xbf16>
    %c0_10 = arith.constant 0 : index
    %c0_11 = arith.constant 0 : index
    %20 = vector.load %arg5[%c0_10, %c0_11] : memref<4x2xbf16, #tpu.memory_space<vmem>>, vector<4x2xbf16>
    %cst_12 = arith.constant dense<0.000000e+00> : vector<32x2xf32>
    %21 = tpu.matmul %19, %20, %cst_12 {dimension_numbers = #tpu.dot_dimension_numbers<[1], [0], [0], [1], [0, 0, 1, 1], [], []>} : vector<32x4xbf16>, vector<4x2xbf16>, vector<32x2xf32> -> vector<32x2xf32>
    %22 = vector.shape_cast %21 : vector<32x2xf32> to vector<4x8x2xf32>
    %c0_13 = arith.constant 0 : index
    %c0_14 = arith.constant 0 : index
    %c0_15 = arith.constant 0 : index
    %c0_16 = arith.constant 0 : index
    %23 = vector.load %arg6[%c0_13, %c0_14, %c0_15, %c0_16] : memref<1x4x8x2xf32, #tpu.memory_space<vmem>>, vector<1x4x8x2xf32>
    %24 = vector.shape_cast %23 : vector<1x4x8x2xf32> to vector<4x8x2xf32>
    %25 = vector.shape_cast %22 : vector<4x8x2xf32> to vector<1x4x8x2xf32>
    tpu.vector_store %arg6[%c0_13, %c0_14, %c0_15, %c0_16], %25 {strides = array<i32>} : memref<1x4x8x2xf32, #tpu.memory_space<vmem>>, vector<1x4x8x2xf32>,
    return
  }
  func.func @transform_0(%arg0: i32, %arg1: i32) -> (i32, i32, i32, i32) {
    %c0_i32 = arith.constant 0 : i32
    %c0_i32_0 = arith.constant 0 : i32
    %c0_i32_1 = arith.constant 0 : i32
    return %arg0, %arg1, %c0_i32, %c0_i32_0 : i32, i32, i32, i32
  }
  func.func @transform_1(%arg0: i32, %arg1: i32) -> (i32, i32) {
    %c0_i32 = arith.constant 0 : i32
    %c0_i32_0 = arith.constant 0 : i32
    %c0_i32_1 = arith.constant 0 : i32
    return %c0_i32, %c0_i32_0 : i32, i32
  }
  func.func @transform_2(%arg0: i32, %arg1: i32) -> (i32, i32) {
    %c0_i32 = arith.constant 0 : i32
    %c0_i32_0 = arith.constant 0 : i32
    %c0_i32_1 = arith.constant 0 : i32
    return %c0_i32, %c0_i32_0 : i32, i32
  }
  func.func @transform_3(%arg0: i32, %arg1: i32) -> (i32, i32) {
    %c0_i32 = arith.constant 0 : i32
    %c0_i32_0 = arith.constant 0 : i32
    %c0_i32_1 = arith.constant 0 : i32
    return %c0_i32, %c0_i32_0 : i32, i32
  }
  func.func @transform_4(%arg0: i32, %arg1: i32) -> (i32, i32, i32, i32) {
    %c0_i32 = arith.constant 0 : i32
    %c0_i32_0 = arith.constant 0 : i32
    %c0_i32_1 = arith.constant 0 : i32
    return %arg0, %arg1, %c0_i32, %c0_i32_0 : i32, i32, i32, i32
  }
}

</mosaic_0001>

<bundles_post_ra>
// kernel: tpu_custom_call.1
= control target key start
LH: loop header
LB: loop body
LE: loop exit
PB: predicated region body
PF: predicated region fallthrough
CT: control target
= control target key end

     0   :  { %s1203_s15 = smov 0   ;;  %s1205_s16 = smov 0   ;;  %s1678_s0 = inlined_call_operand.vmem [shape: f32[2,16,16,4], index: 0, kind: input, shape index: {}]   ;;  %s1679_s1 = inlined_call_operand.vmem [shape: f32[1,4], index: 1, kind: input, shape index: {}]   ;;  %s1680_s2 = inlined_call_operand.vmem [shape: f32[1,4], index: 2, kind: input, shape index: {}]   ;;  %s1681_s3 = inlined_call_operand.vmem [shape: bf16[4,2], index: 3, kind: input, shape index: {}]   ;;  %s1682_s4 = inlined_call_operand.vmem [shape: f32[2,8,8,2], index: 4, kind: output, shape index: {}]  }
   0x1   :  { %s1207_s17 = smov 0   ;;  %s1209_s18 = smov 0  }
   0x2   :  { %s1211_s19 = smov 0  }
   0x3 LB: > { %s23_s20 = sadd.s32 1, %s1167_s17  ;;  %s26_s21 = sadd.s32 1, %s1171_s18  ;;  %s1175_s19 = sphi %s1211_s19, %s14_s19   ;;  %s1171_s18 = sphi %s1209_s18, %s1686_s18   ;;  %s1167_s17 = sphi %s1207_s17, %s1685_s17   ;;  %s1163_s16 = sphi %s1205_s16, %s1684_s16   ;;  %s1159_s15 = sphi %s1203_s15, %s1683_s15  }
   0x4   : > { %p24_p0 = scmp.ge.s32.totalorder %s23_s20, 2  ;;  %p1072_p1 = scmp.ge.s32.totalorder %s1175_s19, 1 }
   0x5   : > { %p184_p2 = scmp.lt.s32.totalorder %s1175_s19, 5 }
   0x6   : > { %s1688_s20 = smov (%p24_p0, %s23_s20), 0  ;;  %s1690_s21 = smov (!%p24_p0, %s26_s21), %s1171_s18 }
   0x7   : > { %p185_p3 = pnand %p1072_p1, %p184_p2  ;;  %p28_p4 = scmp.ge.s32.totalorder %s1690_s21, 2 }
   0x8   : > { %s1073_s22 = sshll.u32 (!%p185_p3), %s1159_s15, 3  ;;  %p220_p5 = scmp.lt.s32.totalorder (!%p185_p3), %s1163_s16, 1  ;;  %v809_v0 = vld [vmem:[%s1681_s3] sm:$0x3] (!%p185_p3)  ;;  %v1177_v1 = vmov (!%p185_p3), 1983009808   ;;  %v356_v3 = vlaneseq (!%p185_p3) }
   0x9   : > { %s1692_s21 = smov (%p28_p4, %s1690_s21), 0  ;;  %188 = sbr.rel (%p185_p3) target bundleno = 356 (0x164), region = 36 }
   0xa   : > { %p222_p6 = scmp.lt.s32.totalorder (!%p185_p3), %s1073_s22, 15  ;;  %v354_v2 = vunpack.c.l.s4 (!%p185_p3), %v1177_v1  ;;  %vm917_vm0 = vcmask (!%p185_p3), 1041408   ;;  %v1080_v5 = vld [vmem:[%s1679_s1] ss:$0 sm:$0xff] (!%p185_p3)  ;;  %v357_v7 = vshrl.u32 (!%p185_p3), %v356_v3, 7  ;;  %vm319_vm1 = vcmask (!%p185_p3), 31744  }
   0xb   : > { %v919_v4 = vsel (!%p185_p3), %vm917_vm0, %v809_v0, 0  ;;  %1095 = vmatprep.subr.msk.bf16.mxu0 (!%p185_p3), %vm917_vm0, %v809_v0  ;;  %v1081_v8 = vld [vmem:[%s1680_s2] ss:$0 sm:$0xff] (!%p185_p3)  ;;  %vm520_vm2 = vcmask (!%p185_p3), 25600   ;;  %vm874_vm3 = vcmask (!%p185_p3), 1041409   ;;  %vm876_vm4 = vcmask (!%p185_p3), 1042434  }
   0xc   : > { %1090 = vmatpush3.bf16.msra.mxu0 (!%p185_p3), %v919_v4  ;;  %v355_v6 = vunpack.c.0.s8 (!%p185_p3), %v354_v2  ;;  %vm878_vm5 = vcmask (!%p185_p3), 1043459   ;;  %vm880_vm6 = vcmask (!%p185_p3), 1044484   ;;  %vm882_vm7 = vcmask (!%p185_p3), 1045509   ;;  %s1077_s10 = sshll.u32 (!%p185_p3), %s1159_s15, 2 }
   0xd   : > { %vm884_vm8 = vcmask (!%p185_p3), 1046534   ;;  %vm886_vm9 = vcmask (!%p185_p3), 1047559   ;;  %p233_p7 = scmp.lt.s32.totalorder (!%p185_p3), %s1077_s10, 7  ;;  %vm970_vm10 = vcmask (!%p185_p3), 15360  }
   0xe   : > { %v1262_v24 = vsub.s32 (!%p185_p3), %v355_v6, %v357_v7 }
  0x10   : > { %s1694_s16 = smov (!%p220_p5, %s1163_s16), 1  ;;  %s1696_s22 = smov (!%p222_p6, %s1073_s22), 15 }
  0x11   : > { %s1075_s25 = sshll.u32 %s1694_s16, 5  ;;  %s1074_s26 = sshll.u32 %s1696_s22, 1 }
  0x12   : > { %s226_s27 = sadd.s32 %s1075_s25, %s1074_s26  ;;  %s1698_s10 = smov (!%p233_p7, %s1077_s10), 7 }
  0x13   : > { %s1076_s28 = sshll.u32 %s226_s27, 3  ;;  %s1078_s11 = sshll.u32 %s1694_s16, 3 }
  0x14   : > { %s1248_s7 = scalar_lea.vmem %s1678_s0, %s1076_s28  ;;  %s236_s12 = sadd.s32 %s1078_s11, %s1698_s10 }
  0x15   : > { %v241_v9 = vld [vmem:[%s1248_s7] sm:$0xff]  ;;  %v242_v10 = vld [vmem:[%s1248_s7 + $0x8] sm:$0xff]  ;;  %v243_v11 = vld [vmem:[%s1248_s7 + $0x10] sm:$0xff]  ;;  %s1079_s13 = sshll.u32 %s236_s12, 3 }
  0x16   : > { %v244_v12 = vld [vmem:[%s1248_s7 + $0x18] sm:$0xff]  ;;  %v245_v13 = vld [vmem:[%s1248_s7 + $0x20] sm:$0xff]  ;;  %v246_v14 = vld [vmem:[%s1248_s7 + $0x28] sm:$0xff]  ;;  %v265_v15 = vmul.f32 %v1080_v5, %v241_v9  ;;  %v266_v16 = vmul.f32 %v1080_v5, %v242_v10  ;;  %v267_v17 = vmul.f32 %v1080_v5, %v243_v11  ;;  %s238_s23 = scalar_lea.vmem %s1682_s4, %s1079_s13 }
  0x17   : > { %v247_v18 = vld [vmem:[%s1248_s7 + $0x30] sm:$0xff]  ;;  %v248_v19 = vld [vmem:[%s1248_s7 + $0x38] sm:$0xff]  ;;  %v249_v20 = vld [vmem:[%s1248_s7 + $0x40] sm:$0xff]  ;;  %v268_v21 = vmul.f32 %v1080_v5, %v244_v12  ;;  %v269_v22 = vmul.f32 %v1080_v5, %v245_v13  ;;  %v270_v23 = vmul.f32 %v1080_v5, %v246_v14 }
  0x18   : > { %v250_v25 = vld [vmem:[%s1248_s7 + $0x48] sm:$0xff]  ;;  %v251_v26 = vld [vmem:[%s1248_s7 + $0x50] sm:$0xff]  ;;  %v252_v27 = vld [vmem:[%s1248_s7 + $0x58] sm:$0xff]  ;;  %v271_v28 = vmul.f32 %v1080_v5, %v247_v18  ;;  %v272_v29 = vmul.f32 %v1080_v5, %v248_v19  ;;  %v273_v30 = vmul.f32 %v1080_v5, %v249_v20  ;;  %v287_v31 = vadd.f32 %v1081_v8, %v265_v15 }
  0x19   : > { %v253_v32 = vld [vmem:[%s1248_s7 + $0x60] sm:$0xff]  ;;  %v254_v33 = vld [vmem:[%s1248_s7 + $0x68] sm:$0xff]  ;;  %v255_v34 = vld [vmem:[%s1248_s7 + $0x70] sm:$0xff]  ;;  %v274_v35 = vmul.f32 %v1080_v5, %v250_v25  ;;  %v275_v36 = vmul.f32 %v1080_v5, %v251_v26  ;;  %v276_v37 = vmul.f32 %v1080_v5, %v252_v27  ;;  %v288_v38 = vadd.f32 %v1081_v8, %v266_v16 }
  0x1a   : > { %v256_v39 = vld [vmem:[%s1248_s7 + $0x78] sm:$0xff]  ;;  %v277_v40 = vmul.f32 %v1080_v5, %v253_v32  ;;  %v278_v41 = vmul.f32 %v1080_v5, %v254_v33  ;;  %v279_v42 = vmul.f32 %v1080_v5, %v255_v34  ;;  %v289_v43 = vadd.f32 %v1081_v8, %v267_v17 }
  0x1b   : > { %v280_v44 = vmul.f32 %v1080_v5, %v256_v39  ;;  %v290_v45 = vadd.f32 %v1081_v8, %v268_v21  ;;  %v291_v46 = vadd.f32 %v1081_v8, %v269_v22  ;;  %v292_v47 = vadd.f32 %v1081_v8, %v270_v23 }
  0x1c   : > { %v293_v48 = vadd.f32 %v1081_v8, %v271_v28  ;;  %v294_v49 = vadd.f32 %v1081_v8, %v272_v29  ;;  %v295_v50 = vadd.f32 %v1081_v8, %v273_v30  ;;  %v296_v51 = vadd.f32 %v1081_v8, %v274_v35 }
  0x1d   : > { %v297_v52 = vadd.f32 %v1081_v8, %v275_v36  ;;  %v298_v53 = vadd.f32 %v1081_v8, %v276_v37  ;;  %v299_v54 = vadd.f32 %v1081_v8, %v277_v40  ;;  %v300_v55 = vadd.f32 %v1081_v8, %v278_v41 }
  0x1e   : > { %v301_v56 = vadd.f32 %v1081_v8, %v279_v42  ;;  %v302_v57 = vadd.f32 %v1081_v8, %v280_v44  ;;  %v303_v58 = vmax.f32 %v287_v31, 0.0  ;;  %v304_v59 = vmax.f32 %v288_v38, 0.0 }
  0x1f   : > { %v305_v60 = vmax.f32 %v289_v43, 0.0  ;;  %v306_v61 = vmax.f32 %v290_v45, 0.0  ;;  %v307_v62 = vmax.f32 %v291_v46, 0.0  ;;  %v308_v63 = vmax.f32 %v292_v47, 0.0 }
  0x20   : > { %v309_v0 = vmax.f32 %v293_v48, 0.0  ;;  %v310_v1 = vmax.f32 %v294_v49, 0.0  ;;  %v311_v2 = vmax.f32 %v295_v50, 0.0  ;;  %v312_v3 = vmax.f32 %v296_v51, 0.0 }
  0x21   : > { %v313_v4 = vmax.f32 %v297_v52, 0.0  ;;  %v314_v5 = vmax.f32 %v298_v53, 0.0  ;;  %v315_v6 = vmax.f32 %v299_v54, 0.0  ;;  %v316_v7 = vmax.f32 %v300_v55, 0.0 }
  0x22   : > { %v317_v9 = vmax.f32 %v301_v56, 0.0  ;;  %v318_v10 = vmax.f32 %v302_v57, 0.0  ;;  %v320_v11 = vsel %vm319_vm1, %v303_v58, 0.0  ;;  %v321_v8 = vsel %vm319_vm1, %v305_v60, 0.0 }
  0x23   : > { %v322_v12 = vadd.f32 %v321_v8, %v320_v11  ;;  %v323_v13 = vsel %vm319_vm1, %v304_v59, 0.0  ;;  %v324_v14 = vsel %vm319_vm1, %v306_v61, 0.0  ;;  %v326_v15 = vsel %vm319_vm1, %v307_v62, 0.0 }
  0x24   : > { %v325_v16 = vadd.f32 %v324_v14, %v323_v13  ;;  %v327_v17 = vsel %vm319_vm1, %v309_v0, 0.0  ;;  %v329_v18 = vsel %vm319_vm1, %v308_v63, 0.0  ;;  %v330_v19 = vsel %vm319_vm1, %v310_v1, 0.0 }
  0x25   : > { %v328_v20 = vadd.f32 %v327_v17, %v326_v15  ;;  %v331_v21 = vadd.f32 %v330_v19, %v329_v18  ;;  %v332_v22 = vsel %vm319_vm1, %v311_v2, 0.0  ;;  %v333_v23 = vsel %vm319_vm1, %v313_v4, 0.0 }
  0x26   : > { %v334_v25 = vadd.f32 %v333_v23, %v332_v22  ;;  %v335_v26 = vsel %vm319_vm1, %v312_v3, 0.0  ;;  %v336_v27 = vsel %vm319_vm1, %v314_v5, 0.0  ;;  %v338_v28 = vsel %vm319_vm1, %v315_v6, 0.0 }
  0x27   : > { %v337_v29 = vadd.f32 %v336_v27, %v335_v26  ;;  %v339_v30 = vsel %vm319_vm1, %v317_v9, 0.0  ;;  %v341_v31 = vsel %vm319_vm1, %v316_v7, 0.0  ;;  %v342_v32 = vsel %vm319_vm1, %v318_v10, 0.0 }
  0x28   : > { %v340_v33 = vadd.f32 %v339_v30, %v338_v28  ;;  %v343_v34 = vadd.f32 %v342_v32, %v341_v31  ;;  %v352_v35 = vcombine.high %v322_v12, %v322_v12  ;;  %v359_v36 = vrot.slane %v322_v12, %v1262_v24 }
  0x29   : > { %v369_v37 = vcombine.high %v325_v16, %v325_v16  ;;  %v376_v38 = vrot.slane %v325_v16, %v1262_v24  ;;  %v386_v39 = vcombine.high %v328_v20, %v328_v20  ;;  %v1290_v40 = vrot.slane %v328_v20, %v1262_v24 }
  0x2a   : > { %v366_v41 = vrot.slane %v352_v35, %v1262_v24  ;;  %v367_v42 = vcombine.high %v359_v36, %v359_v36  ;;  %v403_v43 = vcombine.high %v331_v21, %v331_v21  ;;  %v1294_v44 = vrot.slane %v331_v21, %v1262_v24 }
  0x2b   : > { %v383_v45 = vrot.slane %v369_v37, %v1262_v24  ;;  %v384_v46 = vcombine.high %v376_v38, %v376_v38  ;;  %v1298_v47 = vrot.slane %v386_v39, %v1262_v24  ;;  %v401_v48 = vcombine.high %v1290_v40, %v1290_v40 }
  0x2c   : > { %v368_v49 = vcombine.high %v366_v41, %v366_v41  ;;  %v1303_v50 = vrot.slane %v403_v43, %v1262_v24  ;;  %v418_v51 = vcombine.high %v1294_v44, %v1294_v44  ;;  %v420_v52 = vcombine.high %v334_v25, %v334_v25 }
  0x2d   : > { %v385_v53 = vcombine.high %v383_v45, %v383_v45  ;;  %v402_v54 = vcombine.high %v1298_v47, %v1298_v47  ;;  %v1310_v55 = vrot.slane %v334_v25, %v1262_v24  ;;  %v437_v56 = vcombine.high %v337_v29, %v337_v29 }
  0x2e   : > { %v419_v57 = vcombine.high %v1303_v50, %v1303_v50  ;;  %v1315_v58 = vrot.slane %v420_v52, %v1262_v24  ;;  %v1318_v59 = vrot.slane %v337_v29, %v1262_v24  ;;  %v454_v60 = vcombine.high %v340_v33, %v340_v33 }
  0x2f   : > { %v435_v61 = vcombine.high %v1310_v55, %v1310_v55  ;;  %v1323_v62 = vrot.slane %v437_v56, %v1262_v24  ;;  %v1326_v63 = vrot.slane %v340_v33, %v1262_v24  ;;  %v471_v0 = vcombine.high %v343_v34, %v343_v34 }
  0x30   : > { %v436_v1 = vcombine.high %v1315_v58, %v1315_v58  ;;  %v452_v2 = vcombine.high %v1318_v59, %v1318_v59  ;;  %v1333_v3 = vrot.slane %v454_v60, %v1262_v24  ;;  %v1336_v4 = vrot.slane %v343_v34, %v1262_v24 }
  0x31   : > { %v453_v5 = vcombine.high %v1323_v62, %v1323_v62  ;;  %v469_v6 = vcombine.high %v1326_v63, %v1326_v63  ;;  %v1343_v7 = vrot.slane %v471_v0, %v1262_v24  ;;  %v521_v9 = vsel %vm520_vm2, %v359_v36, 0.0 }
  0x32   : > { %v470_v10 = vcombine.high %v1333_v3, %v1333_v3  ;;  %v486_v11 = vcombine.high %v1336_v4, %v1336_v4  ;;  %v522_v8 = vrot.slane %v521_v9, 4  ;;  %v528_v12 = vsel %vm520_vm2, %v367_v42, 0.0 }
  0x33   : > { %v487_v13 = vcombine.high %v1343_v7, %v1343_v7  ;;  %v529_v14 = vrot.slane %v528_v12, 4  ;;  %v535_v15 = vsel %vm520_vm2, %v366_v41, 0.0  ;;  %v542_v24 = vsel %vm520_vm2, %v368_v49, 0.0 }
  0x34   : > { %v523_v16 = vadd.f32 %v522_v8, %v521_v9  ;;  %v536_v17 = vrot.slane %v535_v15, 4  ;;  %v543_v18 = vrot.slane %v542_v24, 4  ;;  %v549_v19 = vsel %vm520_vm2, %v376_v38, 0.0 }
  0x35   : > { %v530_v20 = vadd.f32 %v529_v14, %v528_v12  ;;  %v550_v21 = vrot.slane %v549_v19, 4  ;;  %v556_v22 = vsel %vm520_vm2, %v384_v46, 0.0  ;;  %v563_v23 = vsel %vm520_vm2, %v383_v45, 0.0 }
  0x36   : > { %v524_v25 = vrot.slane %v523_v16, 2  ;;  %v537_v26 = vadd.f32 %v536_v17, %v535_v15  ;;  %v544_v27 = vadd.f32 %v543_v18, %v542_v24  ;;  %v557_v28 = vrot.slane %v556_v22, 4 }
  0x37   : > { %v531_v29 = vrot.slane %v530_v20, 2  ;;  %v551_v30 = vadd.f32 %v550_v21, %v549_v19  ;;  %v564_v31 = vrot.slane %v563_v23, 4  ;;  %v570_v32 = vsel %vm520_vm2, %v385_v53, 0.0 }
  0x38   : > { %v525_v33 = vadd.f32 %v524_v25, %v523_v16  ;;  %v538_v34 = vrot.slane %v537_v26, 2  ;;  %v545_v35 = vrot.slane %v544_v27, 2  ;;  %v558_v36 = vadd.f32 %v557_v28, %v556_v22 }
  0x39   : > { %v532_v37 = vadd.f32 %v531_v29, %v530_v20  ;;  %v552_v38 = vrot.slane %v551_v30, 2  ;;  %v565_v39 = vadd.f32 %v564_v31, %v563_v23  ;;  %v571_v41 = vrot.slane %v570_v32, 4 }
  0x3a   : > { %v526_v42 = vrot.slane %v525_v33, 1  ;;  %v539_v43 = vadd.f32 %v538_v34, %v537_v26  ;;  %v546_v45 = vadd.f32 %v545_v35, %v544_v27  ;;  %v559_v46 = vrot.slane %v558_v36, 2 }
  0x3b   : > { %v533_v49 = vrot.slane %v532_v37, 1  ;;  %v553_v52 = vadd.f32 %v552_v38, %v551_v30  ;;  %v566_v56 = vrot.slane %v565_v39, 2  ;;  %v572_v60 = vadd.f32 %v571_v41, %v570_v32 }
  0x3c   : > { %v1359_v0 = vadd.f32 %v526_v42, %v525_v33  ;;  %v540_v9 = vrot.slane %v539_v43, 1  ;;  %v547_v53 = vrot.slane %v546_v45, 1  ;;  %v560_v8 = vadd.f32 %v559_v46, %v558_v36 }
  0x3d   : > { %v1361_v12 = vadd.f32 %v533_v49, %v532_v37  ;;  %v554_v14 = vrot.slane %v553_v52, 1  ;;  %v567_v15 = vadd.f32 %v566_v56, %v565_v39  ;;  %v573_v24 = vrot.slane %v572_v60, 2 }
  0x3e   : > { %v1363_v16 = vadd.f32 %v540_v9, %v539_v43  ;;  %v1365_v17 = vadd.f32 %v547_v53, %v546_v45  ;;  %v561_v18 = vrot.slane %v560_v8, 1  ;;  %v577_v19 = vsel %vm520_vm2, %v1290_v40, 0.0 }
  0x3f   : > { %v1369_v20 = vadd.f32 %v554_v14, %v553_v52  ;;  %v568_v21 = vrot.slane %v567_v15, 1  ;;  %v574_v22 = vadd.f32 %v573_v24, %v572_v60  ;;  %v578_v23 = vrot.slane %v577_v19, 4 }
  0x40   : > { %v1371_v25 = vadd.f32 %v561_v18, %v560_v8  ;;  %v584_v26 = vsel %vm520_vm2, %v401_v48, 0.0  ;;  %v591_v27 = vsel %vm520_vm2, %v1298_v47, 0.0  ;;  %v598_v28 = vsel %vm520_vm2, %v402_v54, 0.0 }
  0x41   : > { %v1383_v29 = vadd.f32 %v568_v21, %v567_v15  ;;  %v575_v30 = vrot.slane %v574_v22, 1  ;;  %v579_v31 = vadd.f32 %v578_v23, %v577_v19  ;;  %v585_v32 = vrot.slane %v584_v26, 4 }
  0x42   : > { %v592_v33 = vrot.slane %v591_v27, 4  ;;  %v599_v34 = vrot.slane %v598_v28, 4  ;;  %v605_v40 = vsel %vm520_vm2, %v1294_v44, 0.0  ;;  %v612_v48 = vsel %vm520_vm2, %v418_v51, 0.0 }
  0x43   : > { %v1391_v35 = vadd.f32 %v575_v30, %v574_v22  ;;  %v580_v47 = vrot.slane %v579_v31, 2  ;;  %v586_v36 = vadd.f32 %v585_v32, %v584_v26  ;;  %v606_v54 = vrot.slane %v605_v40, 4 }
  0x44   : > { %v593_v37 = vadd.f32 %v592_v33, %v591_v27  ;;  %v600_v38 = vadd.f32 %v599_v34, %v598_v28  ;;  %v613_v39 = vrot.slane %v612_v48, 4  ;;  %v619_v41 = vsel %vm520_vm2, %v1303_v50, 0.0 }
  0x45   : > { %v581_v42 = vadd.f32 %v580_v47, %v579_v31  ;;  %v587_v43 = vrot.slane %v586_v36, 2  ;;  %v607_v45 = vadd.f32 %v606_v54, %v605_v40  ;;  %v620_v46 = vrot.slane %v619_v41, 4 }
  0x46   : > { %v594_v49 = vrot.slane %v593_v37, 2  ;;  %v601_v52 = vrot.slane %v600_v38, 2  ;;  %v614_v44 = vadd.f32 %v613_v39, %v612_v48  ;;  %v626_v51 = vsel %vm520_vm2, %v419_v57, 0.0 }
  0x47   : > { %v582_v56 = vrot.slane %v581_v42, 1  ;;  %v588_v60 = vadd.f32 %v587_v43, %v586_v36  ;;  %v608_v9 = vrot.slane %v607_v45, 2  ;;  %v621_v53 = vadd.f32 %v620_v46, %v619_v41 }
  0x48   : > { %v595_v8 = vadd.f32 %v594_v49, %v593_v37  ;;  %v602_v14 = vadd.f32 %v601_v52, %v600_v38  ;;  %v615_v15 = vrot.slane %v614_v44, 2  ;;  %v627_v24 = vrot.slane %v626_v51, 4 }
  0x49   : > { %v1399_v18 = vadd.f32 %v582_v56, %v581_v42  ;;  %v589_v19 = vrot.slane %v588_v60, 1  ;;  %v609_v21 = vadd.f32 %v608_v9, %v607_v45  ;;  %v622_v22 = vrot.slane %v621_v53, 2 }
  0x4a   : > { %v596_v23 = vrot.slane %v595_v8, 1  ;;  %v603_v26 = vrot.slane %v602_v14, 1  ;;  %v616_v27 = vadd.f32 %v615_v15, %v614_v44  ;;  %v628_v28 = vadd.f32 %v627_v24, %v626_v51 }
  0x4b   : > { %v1401_v50 = vadd.f32 %v589_v19, %v588_v60  ;;  %v610_v57 = vrot.slane %v609_v21, 1  ;;  %v623_v30 = vadd.f32 %v622_v22, %v621_v53  ;;  %v633_v31 = vsel %vm520_vm2, %v1310_v55, 0.0 }
  0x4c   : > { %v1405_v32 = vadd.f32 %v596_v23, %v595_v8  ;;  %v1407_v33 = vadd.f32 %v603_v26, %v602_v14  ;;  %v617_v34 = vrot.slane %v616_v27, 1  ;;  %v629_v40 = vrot.slane %v628_v28, 2 }
  0x4d   : > { %v1409_v48 = vadd.f32 %v610_v57, %v609_v21  ;;  %v624_v47 = vrot.slane %v623_v30, 1  ;;  %v634_v36 = vrot.slane %v633_v31, 4  ;;  %v640_v54 = vsel %vm520_vm2, %v435_v61, 0.0 }
  0x4e   : > { %v1415_v37 = vadd.f32 %v617_v34, %v616_v27  ;;  %v630_v38 = vadd.f32 %v629_v40, %v628_v28  ;;  %v641_v39 = vrot.slane %v640_v54, 4  ;;  %v647_v41 = vsel %vm520_vm2, %v1315_v58, 0.0 }
  0x4f   : > { %v1419_v42 = vadd.f32 %v624_v47, %v623_v30  ;;  %v635_v43 = vadd.f32 %v634_v36, %v633_v31  ;;  %v648_v45 = vrot.slane %v647_v41, 4  ;;  %v654_v46 = vsel %vm520_vm2, %v436_v1, 0.0 }
  0x50   : > { %v631_v49 = vrot.slane %v630_v38, 1  ;;  %v642_v55 = vadd.f32 %v641_v39, %v640_v54  ;;  %v655_v52 = vrot.slane %v654_v46, 4  ;;  %v661_v61 = vsel %vm520_vm2, %v1318_v59, 0.0 }
  0x51   : > { %v636_v44 = vrot.slane %v635_v43, 2  ;;  %v649_v51 = vadd.f32 %v648_v45, %v647_v41  ;;  %v662_v56 = vrot.slane %v661_v61, 4  ;;  %v668_v60 = vsel %vm520_vm2, %v452_v2, 0.0 }
  0x52   : > { %v1431_v9 = vadd.f32 %v631_v49, %v630_v38  ;;  %v643_v53 = vrot.slane %v642_v55, 2  ;;  %v656_v58 = vadd.f32 %v655_v52, %v654_v46  ;;  %v669_v8 = vrot.slane %v668_v60, 4 }
  0x53   : > { %v637_v1 = vadd.f32 %v636_v44, %v635_v43  ;;  %v650_v14 = vrot.slane %v649_v51, 2  ;;  %v663_v15 = vadd.f32 %v662_v56, %v661_v61  ;;  %v675_v24 = vsel %vm520_vm2, %v1323_v62, 0.0 }
  0x54   : > { %v644_v19 = vadd.f32 %v643_v53, %v642_v55  ;;  %v657_v21 = vrot.slane %v656_v58, 2  ;;  %v670_v22 = vadd.f32 %v669_v8, %v668_v60  ;;  %v676_v23 = vrot.slane %v675_v24, 4 }
  0x55   : > { %v638_v26 = vrot.slane %v637_v1, 1  ;;  %v651_v27 = vadd.f32 %v650_v14, %v649_v51  ;;  %v664_v59 = vrot.slane %v663_v15, 2  ;;  %v682_v2 = vsel %vm520_vm2, %v453_v5, 0.0 }
  0x56   : > { %v645_v28 = vrot.slane %v644_v19, 1  ;;  %v658_v57 = vadd.f32 %v657_v21, %v656_v58  ;;  %v671_v30 = vrot.slane %v670_v22, 2  ;;  %v677_v31 = vadd.f32 %v676_v23, %v675_v24 }
  0x57   : > { %v1439_v34 = vadd.f32 %v638_v26, %v637_v1  ;;  %v652_v40 = vrot.slane %v651_v27, 1  ;;  %v665_v47 = vadd.f32 %v664_v59, %v663_v15  ;;  %v683_v36 = vrot.slane %v682_v2, 4 }
  0x58   : > { %v1441_v54 = vadd.f32 %v645_v28, %v644_v19  ;;  %v659_v38 = vrot.slane %v658_v57, 1  ;;  %v672_v39 = vadd.f32 %v671_v30, %v670_v22  ;;  %v678_v41 = vrot.slane %v677_v31, 2 }
  0x59   : > { %v1443_v43 = vadd.f32 %v652_v40, %v651_v27  ;;  %v666_v45 = vrot.slane %v665_v47, 1  ;;  %v684_v62 = vadd.f32 %v683_v36, %v682_v2  ;;  %v689_v5 = vsel %vm520_vm2, %v1326_v63, 0.0 }
  0x5a   : > { %v1447_v46 = vadd.f32 %v659_v38, %v658_v57  ;;  %v673_v49 = vrot.slane %v672_v39, 1  ;;  %v679_v55 = vadd.f32 %v678_v41, %v677_v31  ;;  %v690_v52 = vrot.slane %v689_v5, 4 }
  0x5b   : > { %v1449_v61 = vadd.f32 %v666_v45, %v665_v47  ;;  %v685_v44 = vrot.slane %v684_v62, 2  ;;  %v696_v51 = vsel %vm520_vm2, %v469_v6, 0.0  ;;  %v703_v56 = vsel %vm520_vm2, %v1333_v3, 0.0 }
  0x5c   : > { %v1457_v60 = vadd.f32 %v673_v49, %v672_v39  ;;  %v680_v53 = vrot.slane %v679_v55, 1  ;;  %v691_v58 = vadd.f32 %v690_v52, %v689_v5  ;;  %v697_v8 = vrot.slane %v696_v51, 4 }
  0x5d   : > { %v686_v1 = vadd.f32 %v685_v44, %v684_v62  ;;  %v704_v14 = vrot.slane %v703_v56, 4  ;;  %v710_v15 = vsel %vm520_vm2, %v470_v10, 0.0  ;;  %v717_v63 = vsel %vm520_vm2, %v1336_v4, 0.0 }
  0x5e   : > { %v1465_v24 = vadd.f32 %v680_v53, %v679_v55  ;;  %v692_v6 = vrot.slane %v691_v58, 2  ;;  %v698_v19 = vadd.f32 %v697_v8, %v696_v51  ;;  %v711_v21 = vrot.slane %v710_v15, 4 }
  0x5f   : > { %v687_v22 = vrot.slane %v686_v1, 1  ;;  %v705_v23 = vadd.f32 %v704_v14, %v703_v56  ;;  %v718_v26 = vrot.slane %v717_v63, 4  ;;  %v724_v27 = vsel %vm520_vm2, %v486_v11, 0.0 }
  0x60   : > { %v693_v59 = vadd.f32 %v692_v6, %v691_v58  ;;  %v699_v3 = vrot.slane %v698_v19, 2  ;;  %v712_v2 = vadd.f32 %v711_v21, %v710_v15  ;;  %v725_v10 = vrot.slane %v724_v27, 4 }
  0x61   : > { %v688_v28 = vadd.f32 %v687_v22, %v686_v1  ;;  %v706_v57 = vrot.slane %v705_v23, 2  ;;  %v719_v30 = vadd.f32 %v718_v26, %v717_v63  ;;  %v731_v31 = vsel %vm520_vm2, %v1343_v7, 0.0 }
  0x62   : > { %v694_v40 = vrot.slane %v693_v59, 1  ;;  %v700_v47 = vadd.f32 %v699_v3, %v698_v19  ;;  %v713_v36 = vrot.slane %v712_v2, 2  ;;  %v726_v38 = vadd.f32 %v725_v10, %v724_v27 }
  0x63   : > { %v707_v39 = vadd.f32 %v706_v57, %v705_v23  ;;  %v720_v41 = vrot.slane %v719_v30, 2  ;;  %v732_v45 = vrot.slane %v731_v31, 4  ;;  %v738_v4 = vsel %vm520_vm2, %v487_v13, 0.0 }
  0x64   : > { %v695_v11 = vadd.f32 %v694_v40, %v693_v59  ;;  %v701_v62 = vrot.slane %v700_v47, 1  ;;  %v714_v5 = vadd.f32 %v713_v36, %v712_v2  ;;  %v727_v49 = vrot.slane %v726_v38, 2 }
  0x65   : > { %v708_v55 = vrot.slane %v707_v39, 1  ;;  %v721_v52 = vadd.f32 %v720_v41, %v719_v30  ;;  %v733_v44 = vadd.f32 %v732_v45, %v731_v31  ;;  %v739_v51 = vrot.slane %v738_v4, 4 }
  0x66   : > { %v702_v56 = vadd.f32 %v701_v62, %v700_v47  ;;  %v715_v53 = vrot.slane %v714_v5, 1  ;;  %v728_v58 = vadd.f32 %v727_v49, %v726_v38  ;;  %v1478_v8 = vmul.f32 0.25, %v1359_v0 }
  0x67   : > { %v709_v1 = vadd.f32 %v708_v55, %v707_v39  ;;  %v722_v14 = vrot.slane %v721_v52, 1  ;;  %v734_v15 = vrot.slane %v733_v44, 2  ;;  %v740_v7 = vadd.f32 %v739_v51, %v738_v4 }
  0x68   : > { %v716_v63 = vadd.f32 %v715_v53, %v714_v5  ;;  %v729_v13 = vrot.slane %v728_v58, 1  ;;  %v1481_v6 = vmul.f32 0.25, %v1361_v12  ;;  %v1484_v19 = vmul.f32 0.25, %v1363_v16 }
  0x69   : > { %v723_v21 = vadd.f32 %v722_v14, %v721_v52  ;;  %v735_v22 = vadd.f32 %v734_v15, %v733_v44  ;;  %v741_v23 = vrot.slane %v740_v7, 2  ;;  %v1487_v26 = vmul.f32 0.25, %v1365_v17 }
  0x6a   : > { %v730_v0 = vadd.f32 %v729_v13, %v728_v58  ;;  %v1490_v27 = vmul.f32 0.25, %v1369_v20  ;;  %v1493_v59 = vmul.f32 0.25, %v1371_v25  ;;  %v1496_v3 = vmul.f32 0.25, %v1383_v29 }
  0x6b   : > { %v736_v12 = vrot.slane %v735_v22, 1  ;;  %v742_v2 = vadd.f32 %v741_v23, %v740_v7  ;;  %v1499_v16 = vmul.f32 0.25, %v1391_v35  ;;  %v1502_v10 = vmul.f32 0.25, %v1399_v18 }
  0x6c   : > { %v1505_v17 = vmul.f32 0.25, %v1401_v50  ;;  %v1508_v20 = vmul.f32 0.25, %v1405_v32  ;;  %v1511_v25 = vmul.f32 0.25, %v1407_v33  ;;  %v1514_v29 = vmul.f32 0.25, %v1409_v48 }
  0x6d   : > { %v737_v57 = vadd.f32 %v736_v12, %v735_v22  ;;  %v743_v30 = vrot.slane %v742_v2, 1  ;;  %v1517_v35 = vmul.f32 0.25, %v1415_v37  ;;  %v1520_v18 = vmul.f32 0.25, %v1419_v42 }
  0x6e   : > { %v1523_v50 = vmul.f32 0.25, %v1431_v9  ;;  %v1526_v32 = vmul.f32 0.25, %v1439_v34  ;;  %v1529_v33 = vmul.f32 0.25, %v1441_v54  ;;  %v1532_v48 = vmul.f32 0.25, %v1443_v43 }
  0x6f   : > { %v744_v31 = vadd.f32 %v743_v30, %v742_v2  ;;  %v1535_v40 = vmul.f32 0.25, %v1447_v46  ;;  %v1538_v37 = vmul.f32 0.25, %v1449_v61  ;;  %v1541_v42 = vmul.f32 0.25, %v1457_v60 }
  0x70   : > { %v1544_v9 = vmul.f32 0.25, %v1465_v24  ;;  %v1546_v34 = vmul.f32 0.25, %v688_v28  ;;  %v1548_v54 = vmul.f32 0.25, %v695_v11  ;;  %v1550_v47 = vmul.f32 0.25, %v702_v56 }
  0x71   : > { %v1552_v43 = vmul.f32 0.25, %v709_v1  ;;  %v1554_v36 = vmul.f32 0.25, %v716_v63  ;;  %v1556_v46 = vmul.f32 0.25, %v723_v21  ;;  %v1558_v61 = vmul.f32 0.25, %v730_v0 }
  0x72   : > { %v1560_v38 = vmul.f32 0.25, %v737_v57  ;;  %v1562_v60 = vmul.f32 0.25, %v744_v31  ;;  %v777_v24 = vpack.c.bf16 %v1478_v8, %v1478_v8  ;;  %v778_v28 = vpack.c.bf16 %v1481_v6, %v1481_v6 }
  0x73   : > { %v779_v39 = vpack.c.bf16 %v1484_v19, %v1484_v19  ;;  %v780_v41 = vpack.c.bf16 %v1487_v26, %v1487_v26  ;;  %v781_v45 = vpack.c.bf16 %v1490_v27, %v1490_v27  ;;  %v782_v4 = vpack.c.bf16 %v1493_v59, %v1493_v59 }
  0x74   : > { %v783_v11 = vpack.c.bf16 %v1496_v3, %v1496_v3  ;;  %v784_v62 = vpack.c.bf16 %v1499_v16, %v1499_v16  ;;  %v785_v5 = vpack.c.bf16 %v1502_v10, %v1502_v10  ;;  %v786_v49 = vpack.c.bf16 %v1505_v17, %v1505_v17 }
  0x75   : > { %v787_v55 = vpack.c.bf16 %v1508_v20, %v1508_v20  ;;  %v788_v52 = vpack.c.bf16 %v1511_v25, %v1511_v25  ;;  %v789_v44 = vpack.c.bf16 %v1514_v29, %v1514_v29  ;;  %v790_v51 = vpack.c.bf16 %v1517_v35, %v1517_v35 }
  0x76   : > { %v791_v56 = vpack.c.bf16 %v1520_v18, %v1520_v18  ;;  %v792_v53 = vpack.c.bf16 %v1523_v50, %v1523_v50  ;;  %v793_v58 = vpack.c.bf16 %v1526_v32, %v1526_v32  ;;  %v794_v8 = vpack.c.bf16 %v1529_v33, %v1529_v33 }
  0x77   : > { %v795_v1 = vpack.c.bf16 %v1532_v48, %v1532_v48  ;;  %v796_v14 = vpack.c.bf16 %v1535_v40, %v1535_v40  ;;  %v797_v15 = vpack.c.bf16 %v1538_v37, %v1538_v37  ;;  %v798_v7 = vpack.c.bf16 %v1541_v42, %v1541_v42 }
  0x78   : > { %v799_v63 = vpack.c.bf16 %v1544_v9, %v1544_v9  ;;  %v800_v13 = vpack.c.bf16 %v1546_v34, %v1546_v34  ;;  %v801_v6 = vpack.c.bf16 %v1548_v54, %v1548_v54  ;;  %v802_v19 = vpack.c.bf16 %v1550_v47, %v1550_v47 }
  0x79   : > { %v803_v21 = vpack.c.bf16 %v1552_v43, %v1552_v43  ;;  %v804_v22 = vpack.c.bf16 %v1554_v36, %v1554_v36  ;;  %v805_v23 = vpack.c.bf16 %v1556_v46, %v1556_v46  ;;  %v806_v26 = vpack.c.bf16 %v1558_v61, %v1558_v61 }
  0x7a   : > { %v807_v0 = vpack.c.bf16 %v1560_v38, %v1560_v38  ;;  %v808_v27 = vpack.c.bf16 %v1562_v60, %v1562_v60  ;;  %v842_v59 = vunpack.c.l.b16 %v777_v24  ;;  %v843_v3 = vunpack.c.l.b16 %v778_v28 }
  0x7b   : > { %v844_v12 = vunpack.c.l.b16 %v779_v39  ;;  %v845_v2 = vunpack.c.l.b16 %v780_v41  ;;  %v846_v16 = vunpack.c.l.b16 %v781_v45  ;;  %v847_v10 = vunpack.c.l.b16 %v782_v4 }
  0x7c   : > { %v848_v17 = vunpack.c.l.b16 %v783_v11  ;;  %v849_v20 = vunpack.c.l.b16 %v784_v62  ;;  %v850_v25 = vunpack.c.l.b16 %v785_v5  ;;  %v851_v29 = vunpack.c.l.b16 %v786_v49 }
  0x7d   : > { %v852_v57 = vunpack.c.l.b16 %v787_v55  ;;  %v853_v30 = vunpack.c.l.b16 %v788_v52  ;;  %v854_v35 = vunpack.c.l.b16 %v789_v44  ;;  %v855_v18 = vunpack.c.l.b16 %v790_v51 }
  0x7e   : > { %v856_v50 = vunpack.c.l.b16 %v791_v56  ;;  %v857_v32 = vunpack.c.l.b16 %v792_v53  ;;  %v858_v33 = vunpack.c.l.b16 %v793_v58  ;;  %v859_v48 = vunpack.c.l.b16 %v794_v8 }
  0x7f   : > { %v860_v31 = vunpack.c.l.b16 %v795_v1  ;;  %v861_v40 = vunpack.c.l.b16 %v796_v14  ;;  %v862_v37 = vunpack.c.l.b16 %v797_v15  ;;  %v863_v42 = vunpack.c.l.b16 %v798_v7 }
  0x80   : > { %v864_v9 = vunpack.c.l.b16 %v799_v63  ;;  %v865_v34 = vunpack.c.l.b16 %v800_v13  ;;  %v866_v54 = vunpack.c.l.b16 %v801_v6  ;;  %v867_v47 = vunpack.c.l.b16 %v802_v19 }
  0x81   : > { %v868_v43 = vunpack.c.l.b16 %v803_v21  ;;  %v869_v36 = vunpack.c.l.b16 %v804_v22  ;;  %v870_v46 = vunpack.c.l.b16 %v805_v23  ;;  %v871_v61 = vunpack.c.l.b16 %v806_v26 }
  0x82   : > { %v872_v38 = vunpack.c.l.b16 %v807_v0  ;;  %v873_v60 = vunpack.c.l.b16 %v808_v27  ;;  %v875_v24 = vsel %vm874_vm3, %v843_v3, %v842_v59  ;;  %v888_v28 = vsel %vm874_vm3, %v851_v29, %v850_v25 }
  0x83   : > { %v877_v39 = vsel %vm876_vm4, %v844_v12, %v875_v24  ;;  %v889_v41 = vsel %vm876_vm4, %v852_v57, %v888_v28  ;;  %v895_v45 = vsel %vm874_vm3, %v859_v48, %v858_v33  ;;  %v902_v4 = vsel %vm874_vm3, %v867_v47, %v866_v54 }
  0x84   : > { %v879_v11 = vsel %vm878_vm5, %v845_v2, %v877_v39  ;;  %v890_v62 = vsel %vm878_vm5, %v853_v30, %v889_v41  ;;  %v896_v5 = vsel %vm876_vm4, %v860_v31, %v895_v45  ;;  %v903_v49 = vsel %vm876_vm4, %v868_v43, %v902_v4 }
  0x85   : > { %v881_v55 = vsel %vm880_vm6, %v846_v16, %v879_v11  ;;  %v891_v52 = vsel %vm880_vm6, %v854_v35, %v890_v62  ;;  %v897_v44 = vsel %vm878_vm5, %v861_v40, %v896_v5  ;;  %v904_v51 = vsel %vm878_vm5, %v869_v36, %v903_v49 }
  0x86   : > { %v883_v56 = vsel %vm882_vm7, %v847_v10, %v881_v55  ;;  %v892_v53 = vsel %vm882_vm7, %v855_v18, %v891_v52  ;;  %v898_v58 = vsel %vm880_vm6, %v862_v37, %v897_v44  ;;  %v905_v8 = vsel %vm880_vm6, %v870_v46, %v904_v51 }
  0x87   : > { %v885_v1 = vsel %vm884_vm8, %v848_v17, %v883_v56  ;;  %v893_v14 = vsel %vm884_vm8, %v856_v50, %v892_v53  ;;  %v899_v15 = vsel %vm882_vm7, %v863_v42, %v898_v58  ;;  %v906_v7 = vsel %vm882_vm7, %v871_v61, %v905_v8 }
  0x88   : > { %v887_v63 = vsel %vm886_vm9, %v849_v20, %v885_v1  ;;  %v894_v13 = vsel %vm886_vm9, %v857_v32, %v893_v14  ;;  %v900_v6 = vsel %vm884_vm8, %v864_v9, %v899_v15  ;;  %v907_v19 = vsel %vm884_vm8, %v872_v38, %v906_v7 }
  0x89   : > { %v901_v21 = vsel %vm886_vm9, %v865_v34, %v900_v6  ;;  %v908_v22 = vsel %vm886_vm9, %v873_v60, %v907_v19  ;;  %v909_v23 = vpack.c.b16 %v894_v13, %v887_v63 }
  0x8a   : > { %v910_v26 = vpack.c.b16 %v908_v22, %v901_v21 }
  0x8b   : > { %1091 = vmatprep.mubr.msk.bf16.mxu0 %vm319_vm1, %v909_v23 }
  0x8c   : > { %1092 = vmatmul.mubr.msk.bf16.vlgmr.msra.gmra.mrb[0].mxu0 %vm319_vm1, %v910_v26 }
 0x15f   : > { %v1093_v0 = vpop.f32.mrb[0].mxu0 }
 0x160   : > { %v955_v27 = vpop.f32.mrb[1].mxu0  ;;  %973 = vst.msk [vmem:[%s238_s23 + $0x10] sm:$0xff] %vm970_vm10, %v1093_v0 }
 0x161   : > { %v1094_v59 = vpop.f32.mrb[2].mxu0  ;;  %971 = vst.msk [vmem:[%s238_s23] sm:$0xff] %vm970_vm10, %v955_v27 }
 0x162   : > { %v958_v3 = vpop.f32.mrb[3].mxu0  ;;  %974 = vst.msk [vmem:[%s238_s23 + $0x18] sm:$0xff] %vm970_vm10, %v1094_v59 }
 0x163   : > { %972 = vst.msk [vmem:[%s238_s23 + $0x8] sm:$0xff] %vm970_vm10, %v958_v3 }
 0x164 PF: > { %s14_s19 = sadd.s32 1, %s1175_s19   ;;  %s1683_s15 = smov %s1167_s17 }
 0x165   : > { %p11_p8 = scmp.ge.s32.totalorder %s14_s19, 6   ;;  %s1684_s16 = smov %s1171_s18 }
 0x166   : > { %s1685_s17 = smov %s1688_s20  ;;  %s1686_s18 = smov %s1692_s21 }
 0x167   :  { %13 = sbr.rel (!%p11_p8) target bundleno = 3 (0x3), region = 66 }

</bundles_post_ra>
